<compile_context>
chip_gen: v5e
topology: v5e:2x2
jax: 0.10.0
libtpu: 0.0.40
codegen_flags: <defaults>
</compile_context>

<pallas_src>
import functools

import jax
import jax.numpy as jnp
from jax.experimental import pallas as pl
from jax.experimental.pallas import tpu as pltpu


# ---------------------------------------------------------------------------
# Layout / sizing helpers.
# ---------------------------------------------------------------------------

def _round_up(x, m):
    return ((x + m - 1) // m) * m


def _padded_tile_bytes(shape, itemsize):
    """VMEM bytes of one block with Mosaic's (sublane, 128) minor-dim padding."""
    dims = list(shape)
    sublane = 8 * max(1, 4 // itemsize)          # f32: 8, bf16: 16, int8: 32
    dims[-1] = _round_up(dims[-1], 128)
    if len(dims) >= 2:
        dims[-2] = _round_up(dims[-2], sublane)
    nbytes = itemsize
    for d in dims:
        nbytes *= d
    return nbytes


def _out_layout(c_in, pad, hw):
    """Pick a lane-dense (G, L) layout for the per-batch output slab.

    The flat per-batch output is c_out*hw contiguous elements
    (c_out = c_in + 2*pad, hw = H2*W2).  Present it as G rows of L lanes so
    the kernel's stores are wide, unmasked vst's.
    """
    c_out = c_in + 2 * pad
    if hw % 128 == 0:                            # e.g. 32x32 -> 16x16 (hw=256)
        lanes = hw
    elif (pad * hw) % 128 == 0 and (c_in * hw) % 128 == 0:
        lanes = 128                              # e.g. 16x16 -> 8x8 (hw=64)
    else:
        lanes = hw                               # generic fallback (masked, correct)
    return lanes, (c_out * hw) // lanes


def _vmem_budget():
    """Return (block byte budget, vmem_limit_bytes) sized from the chip."""
    try:
        capacity = int(pltpu.get_tpu_info().vmem_capacity_bytes)
    except Exception:
        capacity = 64 * 1024 * 1024              # conservative v7x-sized default
    limit = min((capacity * 3) // 4, 100 * 1024 * 1024)
    budget = max(min(limit - 8 * 1024 * 1024, (capacity * 3) // 8),
                 4 * 1024 * 1024)
    return budget, limit


def _needs_two_grid_steps():
    """Only multi-TensorCore chips (v7x) shard a 'parallel' grid axis across
    cores; on single-core v5e/v6e an extra grid step is pure overhead."""
    try:
        kind = jax.devices()[0].device_kind.lower()
    except Exception:
        return True
    single_core = any(tag in kind for tag in
                      ("v5e", "v5 lite", "v5lite", "v6e", "v6 lite", "v6lite"))
    return not single_core


def _choose_bn(n, per_batch_bytes, budget, keep_two_steps):
    """Largest divisor of n whose block fits the VMEM budget."""
    cap = n // 2 if (keep_two_steps and n >= 2) else n
    cap = max(cap, 1)
    best = 1
    for d in range(1, cap + 1):
        if n % d == 0 and d * per_batch_bytes <= budget:
            best = d
    return best


def _reference(x, planes):
    pad = planes // 4
    return jnp.pad(x[:, :, ::2, ::2],
                   ((0, 0), (pad, pad), (0, 0), (0, 0)),
                   mode="constant", constant_values=0)


# ---------------------------------------------------------------------------
# Kernel bodies.
# ---------------------------------------------------------------------------

def _store_band(o_ref, band, *, pad, c_in, hw, lanes):
    """Write (zeros | band | zeros) along the packed channel axis.

    o_ref: (BN, G, lanes) with G = (c_in + 2*pad)*hw // lanes.
    band:  (BN, c_in, hw) -- downsampled data, flat (H2*W2) per channel.
    """
    bn = band.shape[0]
    g_total = o_ref.shape[1]
    band = band.reshape(bn, (c_in * hw) // lanes, lanes).astype(o_ref.dtype)
    r0 = (pad * hw) // lanes
    r1 = r0 + (c_in * hw) // lanes
    if pad > 0:
        o_ref[:, :r0, :] = jnp.zeros((bn, r0, lanes), dtype=o_ref.dtype)
        o_ref[:, r1:, :] = jnp.zeros((bn, g_total - r1, lanes), dtype=o_ref.dtype)
    o_ref[:, r0:r1, :] = band


def _skiprow_kernel(x_any, o_ref, buf, sem, *, bn, c_in, pad, hw, lanes):
    """Primary path.  x_any is the full input in HBM viewed as
    (N, C, H2, 2, W); DMA only the even H rows of this batch block."""
    b = pl.program_id(0)
    start = pl.multiple_of(b * bn, bn)
    copy = pltpu.make_async_copy(
        x_any.at[pl.ds(start, bn), :, :, 0, :],     # even H rows only
        buf, sem.at[0])
    copy.start()
    # The previous step's output writeback (auto-pipelined out_spec) runs
    # concurrently with this wait, so in/out HBM traffic overlaps.
    copy.wait()

    rows = buf[...]                                 # (BN, C, H2, W)
    # Even W columns: pair neighbouring lanes and keep index 0.  Flat index
    # h2*W + 2*j + p -> (h2*W2 + j, p), so [..., 0] is already the lane-dense
    # (H2*W2) output ordering.  Pure XLU shuffle work; XLU is idle here.
    band = rows.reshape(bn, c_in, hw, 2)[..., 0]    # (BN, C, H2*W2)
    _store_band(o_ref, band, pad=pad, c_in=c_in, hw=hw, lanes=lanes)


def _dense_kernel(x_ref, o_ref, *, c_in, pad, h2, w2, lanes):
    """Fallback path: auto-pipelined lane-dense read of the full (C, H*W)
    block; both parities are dropped on the loaded value."""
    bn = x_ref.shape[0]
    hw = h2 * w2
    x = x_ref[...]                                       # (BN, C, H*W)
    cols = x.reshape(bn, c_in, 2 * hw, 2)[..., 0]        # even W -> (BN, C, H*W2)
    rows = cols.reshape(bn, c_in, h2, 2 * w2)[..., :w2]  # even H -> (BN, C, H2, W2)
    band = rows.reshape(bn, c_in, hw)
    _store_band(o_ref, band, pad=pad, c_in=c_in, hw=hw, lanes=lanes)


# ---------------------------------------------------------------------------
# Wrappers.
# ---------------------------------------------------------------------------

def _common_dims(x, planes):
    n, c, h, w = x.shape
    assert h % 2 == 0 and w % 2 == 0, "even H/W assumed (ResNet20 sizes)"
    return n, c, h, w, planes // 4


def _shortcut_skiprows(x, planes):
    n, c, h, w, pad = _common_dims(x, planes)
    c_out = c + 2 * pad
    h2, w2 = h // 2, w // 2
    hw = h2 * w2
    lanes, g = _out_layout(c, pad, hw)
    itemsize = jnp.dtype(x.dtype).itemsize

    # Per-batch VMEM: manual input scratch (even rows only, single-buffered)
    # + double-buffered output block, both with padded minor dims.
    per_batch = (_padded_tile_bytes((c, h2, w), itemsize)
                 + 2 * _padded_tile_bytes((g, lanes), itemsize))
    budget, vmem_limit = _vmem_budget()
    bn = _choose_bn(n, per_batch, budget, _needs_two_grid_steps())

    x_view = x.reshape(n, c, h2, 2, w)               # free contiguous view
    kernel = functools.partial(_skiprow_kernel, bn=bn, c_in=c, pad=pad,
                               hw=hw, lanes=lanes)
    out = pl.pallas_call(
        kernel,
        out_shape=jax.ShapeDtypeStruct((n, g, lanes), x.dtype),
        grid=(n // bn,),
        in_specs=[pl.BlockSpec(memory_space=pl.ANY)],  # keep x in HBM; manual DMA
        out_specs=pl.BlockSpec((bn, g, lanes), lambda b: (b, 0, 0)),
        scratch_shapes=[pltpu.VMEM((bn, c, h2, w), x.dtype),
                        pltpu.SemaphoreType.DMA((1,))],
        compiler_params=pltpu.CompilerParams(
            dimension_semantics=("parallel",),
            vmem_limit_bytes=vmem_limit),
    )(x_view)
    return out.reshape(n, c_out, h2, w2)             # free contiguous reshape


def _shortcut_dense(x, planes):
    n, c, h, w, pad = _common_dims(x, planes)
    c_out = c + 2 * pad
    h2, w2 = h // 2, w // 2
    hw = h2 * w2
    lanes, g = _out_layout(c, pad, hw)
    itemsize = jnp.dtype(x.dtype).itemsize

    per_batch = (2 * _padded_tile_bytes((c, h * w), itemsize)
                 + 2 * _padded_tile_bytes((g, lanes), itemsize))
    budget, vmem_limit = _vmem_budget()
    bn = _choose_bn(n, per_batch, budget, _needs_two_grid_steps())

    x_flat = x.reshape(n, c, h * w)                  # lane-dense, free view
    kernel = functools.partial(_dense_kernel, c_in=c, pad=pad,
                               h2=h2, w2=w2, lanes=lanes)
    out = pl.pallas_call(
        kernel,
        out_shape=jax.ShapeDtypeStruct((n, g, lanes), x.dtype),
        grid=(n // bn,),
        in_specs=[pl.BlockSpec((bn, c, h * w), lambda b: (b, 0, 0))],
        out_specs=pl.BlockSpec((bn, g, lanes), lambda b: (b, 0, 0)),
        compiler_params=pltpu.CompilerParams(
            dimension_semantics=("parallel",),
            vmem_limit_bytes=vmem_limit),
    )(x_flat)
    return out.reshape(n, c_out, h2, w2)


_SKIPROW_PATH_OK = None


def _skiprow_path_available():
    """One-time probe: the primary path relies on a strided-source DMA
    (x_hbm.at[blk, :, :, 0, :]); check it compiles and is bit-exact, then
    cache the decision."""
    global _SKIPROW_PATH_OK
    if _SKIPROW_PATH_OK is None:
        try:
            probe = jnp.arange(2 * 4 * 16 * 16, dtype=jnp.float32)
            probe = probe.reshape(2, 4, 16, 16)
            got = _shortcut_skiprows(probe, 8)
            _SKIPROW_PATH_OK = bool(jnp.array_equal(got, _reference(probe, 8)))
        except Exception:
            _SKIPROW_PATH_OK = False
    return _SKIPROW_PATH_OK


def lambda_layer_shortcut(x, planes):
    """JAX/Pallas equivalent of
    LambdaLayer(lambda x: F.pad(x[:, :, ::2, ::2],
                                (0, 0, 0, 0, planes//4, planes//4),
                                'constant', 0))."""
    if _skiprow_path_available():
        try:
            return _shortcut_skiprows(x, planes)
        except Exception:
            pass                                     # fall back below
    return _shortcut_dense(x, planes)


if __name__ == "__main__":
    key = jax.random.PRNGKey(0)
    k1, k2 = jax.random.split(key)

    # Case 1: small example hitting the packed-lane output path
    # (N=2, C=4, H=W=16, planes=8 -> pad=2, hw=64 -> 128-lane packed rows).
    x1 = jax.random.normal(k1, (2, 4, 16, 16), dtype=jnp.float32)
    out1 = jax.block_until_ready(lambda_layer_shortcut(x1, 8))
    ref1 = _reference(x1, 8)
    assert out1.shape == (2, 8, 8, 8), out1.shape
    assert out1.dtype == x1.dtype
    assert jnp.array_equal(out1, ref1), "mismatch vs reference (case 1)"

    # Case 2: ResNet20 stage-transition shape, hw=256 (already lane-dense) and
    # batch blocking > 1 (N=8, C=16, H=W=32, planes=32 -> pad=8, C_out=32).
    x2 = jax.random.normal(k2, (8, 16, 32, 32), dtype=jnp.float32)
    out2 = jax.block_until_ready(lambda_layer_shortcut(x2, 32))
    ref2 = _reference(x2, 32)
    assert out2.shape == (8, 32, 16, 16), out2.shape
    assert jnp.array_equal(out2, ref2), "mismatch vs reference (case 2)"

    print("KERNEL_OK")
</pallas_src>

<mosaic_0001>
module attributes {stable_mosaic.version = 11 : i64} {
  func.func @_skiprow_kernel(%arg0: i32, %arg1: memref<2x4x8x2x16xf32, #tpu.memory_space<any>>, %arg2: memref<1x4x128xf32, #tpu.memory_space<vmem>>, %arg3: memref<1x4x8x16xf32, #tpu.memory_space<vmem>>, %arg4: memref<1x!tpu.dma_semaphore, #tpu.memory_space<semaphore_mem>>) attributes {dimension_semantics = [#tpu.dimension_semantics<parallel>], iteration_bounds = array<i64: 2>, scalar_prefetch = 0 : i64, scratch_operands = 2 : i64, tpu.core_type = #tpu.core_type<tc>, window_params = [{}, {transform_indices = @transform_1, window_bounds = array<i64: 1, 4, 128>}]} {
    %c1_i32 = arith.constant 1 : i32
    %0 = arith.muli %arg0, %c1_i32 : i32
    %1 = tpu.assume_multiple %0, 1 : i32
    %c0_i32 = arith.constant 0 : i32
    %c0_i32_0 = arith.constant 0 : i32
    %c0_i32_1 = arith.constant 0 : i32
    %c0_i32_2 = arith.constant 0 : i32
    %c0_i32_3 = arith.constant 0 : i32
    %2 = tpu.memref_slice %arg1[%1, %c0_i32_1, %c0_i32_2, %c0_i32, %c0_i32_3] : memref<2x4x8x2x16xf32, #tpu.memory_space<any>> -> memref<1x4x8x1x16xf32, #tpu.memory_space<any>>
    %3 = tpu.memref_squeeze %2 : memref<1x4x8x1x16xf32, #tpu.memory_space<any>> -> memref<1x4x8x16xf32, #tpu.memory_space<any>>
    %4 = tpu.memref_slice %arg4[%c0_i32_0] : memref<1x!tpu.dma_semaphore, #tpu.memory_space<semaphore_mem>> -> memref<1x!tpu.dma_semaphore, #tpu.memory_space<semaphore_mem>>
    %5 = tpu.memref_squeeze %4 : memref<1x!tpu.dma_semaphore, #tpu.memory_space<semaphore_mem>> -> memref<!tpu.dma_semaphore, #tpu.memory_space<semaphore_mem>>
    tpu.enqueue_dma source(%3 : memref<1x4x8x16xf32, #tpu.memory_space<any>>) target(%arg3 : memref<1x4x8x16xf32, #tpu.memory_space<vmem>>) target_semaphore(%5 : memref<!tpu.dma_semaphore, #tpu.memory_space<semaphore_mem>>)
    %c0_i32_4 = arith.constant 0 : i32
    %c0_i32_5 = arith.constant 0 : i32
    %c0_i32_6 = arith.constant 0 : i32
    %c0_i32_7 = arith.constant 0 : i32
    %c0_i32_8 = arith.constant 0 : i32
    %6 = tpu.memref_slice %arg1[%1, %c0_i32_6, %c0_i32_7, %c0_i32_4, %c0_i32_8] : memref<2x4x8x2x16xf32, #tpu.memory_space<any>> -> memref<1x4x8x1x16xf32, #tpu.memory_space<any>>
    %7 = tpu.memref_squeeze %6 : memref<1x4x8x1x16xf32, #tpu.memory_space<any>> -> memref<1x4x8x16xf32, #tpu.memory_space<any>>
    %8 = tpu.memref_slice %arg4[%c0_i32_5] : memref<1x!tpu.dma_semaphore, #tpu.memory_space<semaphore_mem>> -> memref<1x!tpu.dma_semaphore, #tpu.memory_space<semaphore_mem>>
    %9 = tpu.memref_squeeze %8 : memref<1x!tpu.dma_semaphore, #tpu.memory_space<semaphore_mem>> -> memref<!tpu.dma_semaphore, #tpu.memory_space<semaphore_mem>>
    tpu.wait_dma2 semaphore(%9 : memref<!tpu.dma_semaphore, #tpu.memory_space<semaphore_mem>>) src(%7 : memref<1x4x8x16xf32, #tpu.memory_space<any>>) dst(%arg3 : memref<1x4x8x16xf32, #tpu.memory_space<vmem>>)
    %c0 = arith.constant 0 : index
    %c0_9 = arith.constant 0 : index
    %c0_10 = arith.constant 0 : index
    %c0_11 = arith.constant 0 : index
    %10 = vector.load %arg3[%c0, %c0_9, %c0_10, %c0_11] : memref<1x4x8x16xf32, #tpu.memory_space<vmem>>, vector<1x4x8x16xf32>
    %11 = vector.shape_cast %10 : vector<1x4x8x16xf32> to vector<1x4x64x2xf32>
    %12 = vector.extract_strided_slice %11 {offsets = [0, 0, 0, 0], sizes = [1, 4, 64, 1], strides = [1, 1, 1, 1]} : vector<1x4x64x2xf32> to vector<1x4x64x1xf32>
    %13 = vector.shape_cast %12 : vector<1x4x64x1xf32> to vector<1x4x64xf32>
    %14 = vector.shape_cast %13 : vector<1x4x64xf32> to vector<1x2x128xf32>
    %cst = arith.constant 0.000000e+00 : f32
    %15 = vector.broadcast %cst : f32 to vector<1x1x128xf32>
    %c0_12 = arith.constant 0 : index
    %c0_13 = arith.constant 0 : index
    %c0_14 = arith.constant 0 : index
    %16 = vector.load %arg2[%c0_12, %c0_13, %c0_14] : memref<1x4x128xf32, #tpu.memory_space<vmem>>, vector<1x1x128xf32>
    tpu.vector_store %arg2[%c0_12, %c0_13, %c0_14], %15 {strides = array<i32>} : memref<1x4x128xf32, #tpu.memory_space<vmem>>, vector<1x1x128xf32>,
    %cst_15 = arith.constant 0.000000e+00 : f32
    %17 = vector.broadcast %cst_15 : f32 to vector<1x1x128xf32>
    %c0_16 = arith.constant 0 : index
    %c3 = arith.constant 3 : index
    %c0_17 = arith.constant 0 : index
    %18 = vector.load %arg2[%c0_16, %c3, %c0_17] : memref<1x4x128xf32, #tpu.memory_space<vmem>>, vector<1x1x128xf32>
    tpu.vector_store %arg2[%c0_16, %c3, %c0_17], %17 {strides = array<i32>} : memref<1x4x128xf32, #tpu.memory_space<vmem>>, vector<1x1x128xf32>,
    %c0_18 = arith.constant 0 : index
    %c1 = arith.constant 1 : index
    %c0_19 = arith.constant 0 : index
    %19 = vector.load %arg2[%c0_18, %c1, %c0_19] : memref<1x4x128xf32, #tpu.memory_space<vmem>>, vector<1x2x128xf32>
    tpu.vector_store %arg2[%c0_18, %c1, %c0_19], %14 {strides = array<i32>} : memref<1x4x128xf32, #tpu.memory_space<vmem>>, vector<1x2x128xf32>,
    return
  }
  func.func @transform_1(%arg0: i32) -> (i32, i32, i32) {
    %c0_i32 = arith.constant 0 : i32
    %c0_i32_0 = arith.constant 0 : i32
    %c0_i32_1 = arith.constant 0 : i32
    return %arg0, %c0_i32, %c0_i32_0 : i32, i32, i32
  }
}

module attributes {stable_mosaic.version = 11 : i64} {
  func.func @_dense_kernel(%arg0: i32, %arg1: memref<1x4x256xf32, #tpu.memory_space<vmem>>, %arg2: memref<1x4x128xf32, #tpu.memory_space<vmem>>) attributes {dimension_semantics = [#tpu.dimension_semantics<parallel>], iteration_bounds = array<i64: 2>, scalar_prefetch = 0 : i64, scratch_operands = 0 : i64, tpu.core_type = #tpu.core_type<tc>, window_params = [{transform_indices = @transform_0, window_bounds = array<i64: 1, 4, 256>}, {transform_indices = @transform_1, window_bounds = array<i64: 1, 4, 128>}]} {
    %c0 = arith.constant 0 : index
    %c0_0 = arith.constant 0 : index
    %c0_1 = arith.constant 0 : index
    %0 = vector.load %arg1[%c0, %c0_0, %c0_1] : memref<1x4x256xf32, #tpu.memory_space<vmem>>, vector<1x4x256xf32>
    %1 = vector.shape_cast %0 : vector<1x4x256xf32> to vector<1x4x128x2xf32>
    %2 = vector.extract_strided_slice %1 {offsets = [0, 0, 0, 0], sizes = [1, 4, 128, 1], strides = [1, 1, 1, 1]} : vector<1x4x128x2xf32> to vector<1x4x128x1xf32>
    %3 = vector.shape_cast %2 : vector<1x4x128x1xf32> to vector<1x4x128xf32>
    %4 = vector.shape_cast %3 : vector<1x4x128xf32> to vector<1x4x8x16xf32>
    %5 = vector.extract_strided_slice %4 {offsets = [0, 0, 0, 0], sizes = [1, 4, 8, 8], strides = [1, 1, 1, 1]} : vector<1x4x8x16xf32> to vector<1x4x8x8xf32>
    %6 = vector.shape_cast %5 : vector<1x4x8x8xf32> to vector<1x4x64xf32>
    %7 = vector.shape_cast %6 : vector<1x4x64xf32> to vector<1x2x128xf32>
    %cst = arith.constant 0.000000e+00 : f32
    %8 = vector.broadcast %cst : f32 to vector<1x1x128xf32>
    %c0_2 = arith.constant 0 : index
    %c0_3 = arith.constant 0 : index
    %c0_4 = arith.constant 0 : index
    %9 = vector.load %arg2[%c0_2, %c0_3, %c0_4] : memref<1x4x128xf32, #tpu.memory_space<vmem>>, vector<1x1x128xf32>
    tpu.vector_store %arg2[%c0_2, %c0_3, %c0_4], %8 {strides = array<i32>} : memref<1x4x128xf32, #tpu.memory_space<vmem>>, vector<1x1x128xf32>,
    %cst_5 = arith.constant 0.000000e+00 : f32
    %10 = vector.broadcast %cst_5 : f32 to vector<1x1x128xf32>
    %c0_6 = arith.constant 0 : index
    %c3 = arith.constant 3 : index
    %c0_7 = arith.constant 0 : index
    %11 = vector.load %arg2[%c0_6, %c3, %c0_7] : memref<1x4x128xf32, #tpu.memory_space<vmem>>, vector<1x1x128xf32>
    tpu.vector_store %arg2[%c0_6, %c3, %c0_7], %10 {strides = array<i32>} : memref<1x4x128xf32, #tpu.memory_space<vmem>>, vector<1x1x128xf32>,
    %c0_8 = arith.constant 0 : index
    %c1 = arith.constant 1 : index
    %c0_9 = arith.constant 0 : index
    %12 = vector.load %arg2[%c0_8, %c1, %c0_9] : memref<1x4x128xf32, #tpu.memory_space<vmem>>, vector<1x2x128xf32>
    tpu.vector_store %arg2[%c0_8, %c1, %c0_9], %7 {strides = array<i32>} : memref<1x4x128xf32, #tpu.memory_space<vmem>>, vector<1x2x128xf32>,
    return
  }
  func.func @transform_0(%arg0: i32) -> (i32, i32, i32) {
    %c0_i32 = arith.constant 0 : i32
    %c0_i32_0 = arith.constant 0 : i32
    %c0_i32_1 = arith.constant 0 : i32
    return %arg0, %c0_i32, %c0_i32_0 : i32, i32, i32
  }
  func.func @transform_1(%arg0: i32) -> (i32, i32, i32) {
    %c0_i32 = arith.constant 0 : i32
    %c0_i32_0 = arith.constant 0 : i32
    %c0_i32_1 = arith.constant 0 : i32
    return %arg0, %c0_i32, %c0_i32_0 : i32, i32, i32
  }
}

</mosaic_0001>

<bundles_post_ra>
// kernel: tpu_custom_call.1
= control target key start
LH: loop header
LB: loop body
LE: loop exit
PB: predicated region body
PF: predicated region fallthrough
CT: control target
= control target key end

     0   :  { %6 = vsyncpa [#allocation3], 0  ;;  %s2140_s0 = inlined_call_operand.hbm [shape: f32[2,4,256], index: 0, kind: input, shape index: {}]   ;;  %s2141_s1 = inlined_call_operand.hbm [shape: f32[2,4,128], index: 1, kind: output, shape index: {}]  }
   0x1   :  { %8 = vsyncpa [#allocation3 + $0x1], 0 }
   0x2   :  { %9 = vsyncpa [#allocation4], 0 }
   0x3   :  { %11 = vsyncpa [#allocation4 + $0x1], 0  ;;  %s1449_s6 = smov 0   ;;  %s1451_s7 = smov 0  }
   0x4   :  { %s1453_s8 = smov 0   ;;  %s1455_s9 = smov 0  }
   0x5 LB: > { %s1470_s10 = sadd.s32 4294967295, %s1402_s9   ;;  %s1192_s11 = sadd.s32 4294967294, %s1402_s9   ;;  %s1402_s9 = sphi %s1455_s9, %s2151_s9   ;;  %s1398_s8 = sphi %s1453_s8, %s2150_s8   ;;  %s1394_s7 = sphi %s1451_s7, %s2149_s7   ;;  %s1390_s6 = sphi %s1449_s6, %s2148_s6  }
   0x6   : > { %s1474_s12 = sadd.s32 1, %s1402_s9   ;;  %s24_s13 = sadd.s32 1, %s1398_s8 }
   0x7   : > { %s21_s14 = ssub.s32 %s1402_s9, %s1474_s12  ;;  %p31_p0 = scmp.ne.s32.totalorder %s1398_s8, %s1394_s7 }
   0x8   : > { %p22_p1 = scmp.eq.s32.totalorder %s21_s14, 0  ;;  %p32_p2 = scmp.eq.s32.totalorder %s1402_s9, 0 }
   0x9   : > { %p37_p3 = scmp.ne.s32.totalorder %s1394_s7, %s1390_s6  ;;  %p38_p4 = scmp.eq.s32.totalorder %s1470_s10, 0 }
   0xa   : > { %s1486_s15 = scalar_select %p22_p1, %s1398_s8, %s24_s13  }
   0xb   : > { %p1488_p5 = por %p32_p2, %p31_p0  ;;  %p1492_p6 = por %p38_p4, %p37_p3 }
   0xc   : > { %p61_p7 = scmp.eq.s32.totalorder %s1470_s10, 1  ;;  %p67_p8 = scmp.eq.s32.totalorder %s1192_s11, 1 }
   0xd   : > { %p1234_p10 = scmp.lt.s32.totalorder %s1402_s9, 2  ;;  %s87_s20 = sand.u32 1, %s1398_s8  }
   0xe   : > { %p1499_p11 = por %p61_p7, %p31_p0  ;;  %p1503_p12 = por %p67_p8, %p37_p3 }
   0xf   : > { %s1221_s21 = sshll.u32 %s1402_s9, 3  ;;  %s1195_s22 = sshll.u32 %s87_s20, 3 }
  0x10   : > { %s96_s25 = scalar_lea.hbm %s2140_s0, %s1221_s21  ;;  %s91_s27 = scalar_lea.vmem [#allocation2], %s1195_s22 }
  0x11   : > { %s98_s26 = sshll.u32 %s96_s25, 4  ;;  %s100_s28 = sshll.u32 %s91_s27, 4  ;;  %s99_s26 = int_to_ptr.hbm [resolvable:$true] %s98_s26  ;;  %s101_s28 = int_to_ptr.vmem [resolvable:$true] %s100_s28 }
  0x12   : > { %p1514_p13 = pnand %p1234_p10, %p1488_p5  ;;  %p1198_p0 = scmp.ge.s32.totalorder %s1402_s9, 1 }
  0x13   : > { %p105_p1 = scmp.lt.s32.totalorder %s1402_s9, 3  ;;  %s88_s30 = scalar_lea.sflag [#allocation3], %s87_s20 }
  0x14   : > { %s1306_s2 = sshra.s32 %s99_s26, 4  ;;  %p1310_p3 = pneg %p1514_p13  ;;  %s1307_s2 = int_to_ptr.hbm [resolvable:$true] %s1306_s2 }
  0x15   : > { %s1308_s3 = scalar_lea.hbm %s1307_s2, 8  ;;  %s1313_s11 = scalar_lea.hbm %s2140_s0, 16 }
  0x16   : > { %p1309_p2 = scmp.ne.s32.totalorder %s1307_s2, %s1308_s3  ;;  %p1314_p5 = scmp.lt.s32.totalorder %s1307_s2, %s2140_s0 }
  0x17   : > { %p1315_p8 = scmp.lt.s32.totalorder %s1313_s11, %s1308_s3 }
  0x18   : > { %p1311_p4 = pnand %p1310_p3, %p1309_p2 }
  0x19   : > { %p1316_p10 = por %p1315_p8, %p1314_p5 }
  0x1a   : > { %p1312_p7 = pneg %p1311_p4 }
  0x1c   : > { %p1317_p9 = pnand %p1316_p10, %p1312_p7 }
  0x1e   : > { %1320 = shalt.err (!%p1317_p9)
}
  0x1f   : > { %1229 = dma.hbm_to_vmem [thread:$0]  (!%p1514_p13), %s99_s26, 128, %s101_s28, %s88_s30  }
  0x20   : > { %p106_p2 = pnand %p1198_p0, %p105_p1 }
  0x21   : > { %s1535_s16 = sand.u32 (!%p106_p2), 1, %s1394_s7  }
  0x22   : > { %109 = sbr.rel (%p106_p2) target bundleno = 450 (0x1c2), region = 24  ;;  %s1199_s20 = sshll.u32 (!%p106_p2), %s1535_s16, 3 }
  0x23   : > { %s112_s21 = scalar_lea.sflag (!%p106_p2), [#allocation3], %s1535_s16  ;;  %s115_s22 = scalar_lea.vmem (!%p106_p2), [#allocation2], %s1199_s20 }
  0x27   : > { %1381 = dma.done.wait (%p1492_p6), %s112_s21, 128  }
  0x28   : > { %1383 = vsyncadd (%p1492_p6), %s112_s21, 4294967168  ;;  %v1543_v0 = vld [vmem:[%s115_s22] sm:$0xff]  ;;  %s1404_s23 = smov 122   ;;  %s1405_s24 = smov 126   ;;  %v1435_v4 = vmov 1983009808  }
  0x29   : > { %147 = vrot.lane.b32.xlu1 %v1543_v0, %s1404_s23  ;;  %139 = vrot.lane.b32.xlu0 %v1543_v0, %s1405_s24  ;;  %s1406_s25 = smov 118   ;;  %s1407_s26 = smov 120   ;;  %v298_v5 = vunpack.c.l.s4 %v1435_v4  ;;  %vm295_vm0 = vcmask 1047556   ;;  %v1436_v14 = vmov 0   ;;  %v1437_v15 = vmov 1934713408  }
  0x2a   : > { %155 = vrot.lane.b32.xlu2 %v1543_v0, %s1406_s25  ;;  %s1408_s27 = smov 124   ;;  %s1409_s28 = smov 116   ;;  %1303 = vset.pattern.permute.xlu1 %v1436_v14  ;;  %v312_v16 = vunpack.c.l.s4 %v1437_v15  ;;  %v137_v32 = vrot.slane %v1543_v0, 4  ;;  %vm1013_vm1 = vcmask 130112   ;;  %vm1017_vm2 = vcmask 195712  }
  0x2b   : > { %s1410_s17 = smov 96   ;;  %s1411_s29 = smov 114   ;;  %v1578_v9 = vunpack.c.0.s8 %v298_v5  ;;  %1304 = vset.pattern.permute.xlu2 %v1436_v14  ;;  %1305 = vset.pattern.permute.xlu0 %v1436_v14  ;;  %vm1021_vm3 = vcmask 261312   ;;  %vm1025_vm4 = vcmask 326912   ;;  %vm1029_vm5 = vcmask 392512  }
  0x2c   : > { %s1412_s30 = smov 94   ;;  %s1413_s2 = smov 90   ;;  %v1592_v22 = vunpack.c.0.s8 %v312_v16  ;;  %vm1033_vm6 = vcmask 458112   ;;  %vm1037_vm7 = vcmask 523712   ;;  %vm1041_vm8 = vcmask 589312  }
  0x2d   : > { %s1414_s3 = smov 92   ;;  %s1415_s4 = smov 88   ;;  %vm1045_vm9 = vcmask 654912   ;;  %vm1049_vm10 = vcmask 720512   ;;  %vm1053_vm11 = vcmask 786112   ;;  %vm1057_vm12 = vcmask 851712  }
  0x2e   : > { %s1416_s5 = smov 84   ;;  %s1417_s11 = smov 86   ;;  %vm1061_vm13 = vcmask 917312   ;;  %vm1065_vm14 = vcmask 982912   ;;  %vm1069_vm15 = vcmask 1048512  }
  0x2f   : > { %s1418_s13 = smov 82   ;;  %s1419_s14 = smov 62  }
  0x30   : > { %s1420_s20 = smov 64   ;;  %s1421_s21 = smov 60  }
  0x31   : > { %151 = vrot.lane.b32.xlu1 %v1543_v0, %s1407_s26  ;;  %143 = vrot.lane.b32.xlu0 %v1543_v0, %s1408_s27  ;;  %s1422_s22 = smov 56   ;;  %s1423_s23 = smov 58  }
  0x32   : > { %159 = vrot.lane.b32.xlu2 %v1543_v0, %s1409_s28  ;;  %s1424_s24 = smov 54   ;;  %s1425_s25 = smov 50  }
  0x33   : > { %s1426_s26 = smov 52   ;;  %s1427_s27 = smov 32  }
  0x34   : > { %s1428_s28 = smov 28  }
  0x39   : > { %167 = vrot.lane.b32.xlu1 %v1543_v0, %s1410_s17  ;;  %163 = vrot.lane.b32.xlu0 %v1543_v0, %s1411_s29  ;;  %s1429_s17 = smov 30   ;;  %s1430_s29 = smov 26  }
  0x3a   : > { %171 = vrot.lane.b32.xlu2 %v1543_v0, %s1412_s30  ;;  %s1431_s30 = smov 24  }
  0x41   : > { %179 = vrot.lane.b32.xlu1 %v1543_v0, %s1413_s2  ;;  %175 = vrot.lane.b32.xlu0 %v1543_v0, %s1414_s3  ;;  %s1432_s2 = smov 22   ;;  %s1433_s3 = smov 20  }
  0x42   : > { %183 = vrot.lane.b32.xlu2 %v1543_v0, %s1415_s4  ;;  %s1434_s4 = smov 18  }
  0x49   : > { %191 = vrot.lane.b32.xlu1 %v1543_v0, %s1416_s5  ;;  %187 = vrot.lane.b32.xlu0 %v1543_v0, %s1417_s11  ;;  %s1200_s5 = sshll.u32 %s1535_s16, 2 }
  0x4a   : > { %195 = vrot.lane.b32.xlu2 %v1543_v0, %s1418_s13  ;;  %s2057_s11 = scalar_lea.vmem [#allocation5], %s1200_s5  ;;  %s1218_s13 = sshll.u32 %s1470_s10, 2 }
  0x4b   : > { %s1119_s10 = sshll.u32 %s2057_s11, 4  ;;  %s1120_s10 = int_to_ptr.vmem [resolvable:$true] %s1119_s10 }
  0x51   : > { %203 = vrot.lane.b32.xlu1 %v1543_v0, %s1419_s14  ;;  %199 = vrot.lane.b32.xlu0 %v1543_v0, %s1420_s20 }
  0x52   : > { %207 = vrot.lane.b32.xlu2 %v1543_v0, %s1421_s21  ;;  %s1117_s21 = scalar_lea.hbm %s2141_s1, %s1218_s13 }
  0x59   : > { %215 = vrot.lane.b32.xlu1 %v1543_v0, %s1422_s22  ;;  %211 = vrot.lane.b32.xlu0 %v1543_v0, %s1423_s23  ;;  %s1121_s22 = sshll.u32 %s1117_s21, 4  ;;  %s1107_s23 = scalar_lea.sflag [#allocation4], %s1535_s16  ;;  %s1122_s22 = int_to_ptr.hbm [resolvable:$true] %s1121_s22 }
  0x5a   : > { %219 = vrot.lane.b32.xlu2 %v1543_v0, %s1424_s24  ;;  %s1350_s24 = sshra.s32 %s1122_s22, 4  ;;  %s1351_s24 = int_to_ptr.hbm [resolvable:$true] %s1350_s24 }
  0x5b   : > { %p1357_p0 = scmp.lt.s32.totalorder %s1351_s24, %s2141_s1 }
  0x61   : > { %227 = vrot.lane.b32.xlu1 %v1543_v0, %s1425_s25  ;;  %223 = vrot.lane.b32.xlu0 %v1543_v0, %s1426_s26  ;;  %s1352_s25 = scalar_lea.hbm %s1351_s24, 4 }
  0x62   : > { %231 = vrot.lane.b32.xlu2 %v1543_v0, %s1427_s27  ;;  %p1353_p6 = scmp.ne.s32.totalorder %s1351_s24, %s1352_s25 }
  0x64   : > { %p1354_p9 = pnand %p1353_p6, %p1499_p11 }
  0x66   : > { %p1355_p13 = pneg %p1354_p9 }
  0x69   : > { %239 = vrot.lane.b32.xlu1 %v1543_v0, %s1428_s28  ;;  %235 = vrot.lane.b32.xlu0 %v1543_v0, %s1429_s17  ;;  %s1356_s28 = scalar_lea.hbm %s2141_s1, 8 }
  0x6a   : > { %243 = vrot.lane.b32.xlu2 %v1543_v0, %s1430_s29  ;;  %p1358_p1 = scmp.lt.s32.totalorder %s1356_s28, %s1352_s25 }
  0x6c   : > { %p1359_p3 = por %p1358_p1, %p1357_p0 }
  0x6e   : > { %p1360_p4 = pnand %p1359_p3, %p1355_p13 }
  0x71   : > { %247 = vrot.lane.b32.xlu0 %v1543_v0, %s1431_s30  ;;  %251 = vrot.lane.b32.xlu1 %v1543_v0, %s1432_s2 }
  0x72   : > { %255 = vrot.lane.b32.xlu2 %v1543_v0, %s1433_s3 }
  0x79   : > { %259 = vrot.lane.b32.xlu0 %v1543_v0, %s1434_s4 }
  0x84   : > { %v156_v1 = vpop.permute.xlu2 %155 }
  0x85   : > { %v157_v30 = vrot.slane %v156_v1, 4 }
  0x8c   : > { %v160_v2 = vpop.permute.xlu2 %159 }
  0x8d   : > { %v323_v25 = vrot.slane %v160_v2, 4 }
  0x94   : > { %v1576_v8 = vpop.permute.xlu2 %171 }
  0x95   : > { %v173_v63 = vrot.slane %v1576_v8, 4 }
  0x9b   : > { %v148_v3 = vpop.permute.xlu1 %147  ;;  %v140_v6 = vpop.permute.xlu0 %139 }
  0x9c   : > { %v301_v7 = vrot.slane %v148_v3, 4  ;;  %v1586_v19 = vpop.permute.xlu2 %183  ;;  %v141_v28 = vrot.slane %v140_v6, 4 }
  0x9e   : > { %v302_v10 = vsel %vm295_vm0, %v301_v7, %v140_v6  ;;  %v526_v37 = vsel %vm295_vm0, %v148_v3, %v141_v28 }
  0x9f   : > { %v1582_v11 = vperm.slane %v302_v10, %v1578_v9  ;;  %v1619_v45 = vperm.slane %v526_v37, %v1578_v9 }
  0xa1   : > { %v307_v20 = vrot.slane %v1582_v11, 4  ;;  %v531_v56 = vrot.slane %v1619_v45, 4 }
  0xa3   : > { %v152_v12 = vpop.permute.xlu1 %151  ;;  %v144_v13 = vpop.permute.xlu0 %143 }
  0xa4   : > { %v294_v17 = vrot.slane %v144_v13, 4  ;;  %v324_v31 = vsel %vm295_vm0, %v323_v25, %v152_v12  ;;  %v196_v36 = vpop.permute.xlu2 %195  ;;  %v153_v38 = vrot.slane %v152_v12, 4  ;;  %v520_v41 = vsel %vm295_vm0, %v144_v13, %v137_v32 }
  0xa5   : > { %v1611_v39 = vperm.slane %v324_v31, %v1578_v9  ;;  %v1626_v51 = vperm.slane %v520_v41, %v1578_v9  ;;  %v385_v61 = vrot.slane %v196_v36, 4 }
  0xa6   : > { %v296_v18 = vsel %vm295_vm0, %v294_v17, %v1543_v0  ;;  %v548_v50 = vsel %vm295_vm0, %v160_v2, %v153_v38 }
  0xa7   : > { %v1590_v21 = vperm.slane %v296_v18, %v1578_v9  ;;  %v1638_v57 = vperm.slane %v548_v50, %v1578_v9  ;;  %v532_v60 = vsel %vm295_vm0, %v531_v56, %v1626_v51  ;;  %v185_v18 = vrot.slane %v1586_v19, 4 }
  0xa8   : > { %v538_v6 = vperm.slane %v532_v60, %v1592_v22 }
  0xa9   : > { %v308_v23 = vsel %vm295_vm0, %v307_v20, %v1590_v21 }
  0xaa   : > { %v1597_v24 = vperm.slane %v308_v23, %v1592_v22 }
  0xab   : > { %v1599_v26 = vpop.permute.xlu1 %167  ;;  %v164_v27 = vpop.permute.xlu0 %163 }
  0xac   : > { %809 = vst [vmem:[#allocation1] ss:$2 sm:$0xff] %v1597_v24  ;;  %v329_v29 = vrot.slane %v164_v27, 4  ;;  %v554_v35 = vsel %vm295_vm0, %v164_v27, %v157_v30  ;;  %v1646_v62 = vpop.permute.xlu2 %207  ;;  %v169_v17 = vrot.slane %v1599_v26, 4  ;;  %v319_v20 = vrot.slane %v1597_v24, 4 }
  0xad   : > { %v1616_v42 = vperm.slane %v554_v35, %v1578_v9 }
  0xae   : > { %v330_v33 = vsel %vm295_vm0, %v329_v29, %v156_v1 }
  0xaf   : > { %v1606_v34 = vperm.slane %v330_v33, %v1578_v9  ;;  %v559_v54 = vrot.slane %v1616_v42, 4  ;;  %v320_v33 = vsel %vm295_vm0, 0.0, %v319_v20 }
  0xb1   : > { %v335_v40 = vrot.slane %v1606_v34, 4  ;;  %v560_v0 = vsel %vm295_vm0, %v559_v54, %v1638_v57 }
  0xb2   : > { %v566_v7 = vperm.slane %v560_v0, %v1592_v22 }
  0xb3   : > { %v180_v43 = vpop.permute.xlu1 %179  ;;  %v176_v44 = vpop.permute.xlu0 %175  ;;  %v336_v46 = vsel %vm295_vm0, %v335_v40, %v1611_v39 }
  0xb4   : > { %v357_v47 = vrot.slane %v180_v43, 4  ;;  %v351_v48 = vrot.slane %v176_v44, 4  ;;  %v342_v49 = vperm.slane %v336_v46, %v1592_v22  ;;  %v582_v13 = vsel %vm295_vm0, %v180_v43, %v173_v63  ;;  %v1688_v32 = vpop.permute.xlu2 %219 }
  0xb5   : > { %v1673_v23 = vperm.slane %v582_v13, %v1578_v9  ;;  %v576_v24 = vsel %vm295_vm0, %v176_v44, %v169_v17  ;;  %v407_v46 = vrot.slane %v1646_v62, 4  ;;  %v571_v50 = vrot.slane %v566_v7, 4 }
  0xb6   : > { %v358_v52 = vsel %vm295_vm0, %v357_v47, %v1576_v8  ;;  %v352_v53 = vsel %vm295_vm0, %v351_v48, %v1599_v26  ;;  %811 = vst [vmem:[#allocation1 + $0x1] ss:$2 sm:$0xff] %v342_v49  ;;  %v347_v31 = vrot.slane %v342_v49, 4  ;;  %v1696_v41 = vperm.slane %v576_v24, %v1578_v9 }
  0xb7   : > { %v1634_v55 = vperm.slane %v358_v52, %v1578_v9  ;;  %v1642_v59 = vperm.slane %v352_v53, %v1578_v9  ;;  %v587_v35 = vrot.slane %v1673_v23, 4  ;;  %v543_v53 = vrot.slane %v538_v6, 4 }
  0xb8   : > { %v348_v40 = vsel %vm295_vm0, 0.0, %v347_v31 }
  0xb9   : > { %v363_v58 = vrot.slane %v1634_v55, 4  ;;  %v588_v44 = vsel %vm295_vm0, %v587_v35, %v1696_v41 }
  0xba   : > { %v1709_v54 = vperm.slane %v588_v44, %v1592_v22 }
  0xbb   : > { %v364_v1 = vsel %vm295_vm0, %v363_v58, %v1642_v59  ;;  %v192_v2 = vpop.permute.xlu1 %191  ;;  %v188_v3 = vpop.permute.xlu0 %187 }
  0xbc   : > { %v1654_v4 = vperm.slane %v364_v1, %v1592_v22  ;;  %v379_v5 = vrot.slane %v192_v2, 4  ;;  %v386_v12 = vsel %vm295_vm0, %v385_v61, %v188_v3  ;;  %v189_v15 = vrot.slane %v188_v3, 4  ;;  %v1722_v0 = vpop.permute.xlu2 %231 }
  0xbd   : > { %v824_v10 = vld.sshfl [vmem:[#allocation1] sm:$0xff pattern:$0x75316420]  ;;  %v1667_v16 = vperm.slane %v386_v12, %v1578_v9  ;;  %v572_v1 = vsel %vm295_vm0, 0.0, %v571_v50  ;;  %v309_v3 = vrot.slane %v1590_v21, 4 }
  0xbe   : > { %813 = vst [vmem:[#allocation1 + $0x10] ss:$2 sm:$0xff] %v1654_v4  ;;  %v380_v8 = vsel %vm295_vm0, %v379_v5, %v1586_v19  ;;  %913 = vperm.xlu1 %1303, %v824_v10   ;;  %v610_v27 = vsel %vm295_vm0, %v196_v36, %v189_v15  ;;  %v604_v36 = vsel %vm295_vm0, %v192_v2, %v185_v18  ;;  %v544_v5 = vsel %vm295_vm0, 0.0, %v543_v53 }
  0xbf   : > { %828 = vst [vmem:[#allocation1] ss:$2 sm:$0xff] %v538_v6  ;;  %v1664_v14 = vperm.slane %v380_v8, %v1578_v9  ;;  %v391_v25 = vrot.slane %v1667_v16, 4  ;;  %v1678_v28 = vperm.slane %v610_v27, %v1578_v9  ;;  %v1699_v43 = vperm.slane %v604_v36, %v1578_v9 }
  0xc0   : > { %829 = vst [vmem:[#allocation1 + $0x1] ss:$2 sm:$0xff] %v566_v7  ;;  %v337_v10 = vrot.slane %v1611_v39, 4  ;;  %v375_v8 = vrot.slane %v1654_v4, 4  ;;  %v221_v18 = vrot.slane %v1688_v32, 4  ;;  %v533_v4 = vrot.slane %v1626_v51, 4 }
  0xc1   : > { %v392_v19 = vsel %vm295_vm0, %v391_v25, %v1664_v14  ;;  %v615_v38 = vrot.slane %v1678_v28, 4  ;;  %v310_v25 = vsel %vm295_vm0, %v1582_v11, %v309_v3 }
  0xc2   : > { %v398_v26 = vperm.slane %v392_v19, %v1592_v22  ;;  %v376_v31 = vsel %vm295_vm0, 0.0, %v375_v8  ;;  %v1758_v51 = vperm.slane %v310_v25, %v1592_v22  ;;  %v365_v25 = vrot.slane %v1642_v59, 4 }
  0xc3   : > { %v1680_v29 = vpop.permute.xlu1 %203  ;;  %v1682_v30 = vpop.permute.xlu0 %199  ;;  %v616_v47 = vsel %vm295_vm0, %v615_v38, %v1699_v43 }
  0xc4   : > { %815 = vst [vmem:[#allocation1 + $0x11] ss:$2 sm:$0xff] %v398_v26  ;;  %v1712_v56 = vperm.slane %v616_v47, %v1592_v22  ;;  %v408_v60 = vsel %vm295_vm0, %v407_v46, %v1682_v30  ;;  %v205_v12 = vrot.slane %v1680_v29, 4  ;;  %v403_v17 = vrot.slane %v398_v26, 4  ;;  %v1769_v38 = vpop.permute.xlu2 %243 }
  0xc5   : > { %v1731_v6 = vperm.slane %v408_v60, %v1578_v9 }
  0xc7   : > { %v836_v37 = vld.sshfl [vmem:[#allocation1] sm:$0xff pattern:$0x75316420] }
  0xc8   : > { %840 = vst [vmem:[#allocation1] ss:$2 sm:$0xff] %v320_v33 }
  0xc9   : > { %841 = vst [vmem:[#allocation1 + $0x1] ss:$2 sm:$0xff] %v348_v40 }
  0xcb   : > { %v1706_v48 = vpop.permute.xlu1 %215  ;;  %v212_v49 = vpop.permute.xlu0 %211  ;;  %v825_v58 = vld.sshfl [vmem:[#allocation1 + $0x10] sm:$0xff pattern:$0x75316420] }
  0xcc   : > { %v413_v52 = vrot.slane %v212_v49, 4  ;;  %830 = vst [vmem:[#allocation1 + $0x10] ss:$2 sm:$0xff] %v1709_v54  ;;  %916 = vperm.xlu2 %1304, %v825_v58   ;;  %v638_v24 = vsel %vm295_vm0, %v212_v49, %v205_v12  ;;  %v217_v40 = vrot.slane %v1706_v48, 4  ;;  %v561_v49 = vrot.slane %v1638_v57, 4 }
  0xcd   : > { %831 = vst [vmem:[#allocation1 + $0x11] ss:$2 sm:$0xff] %v1712_v56  ;;  %v1775_v44 = vperm.slane %v638_v24, %v1578_v9  ;;  %v469_v58 = vrot.slane %v1769_v38, 4  ;;  %v534_v57 = vsel %vm295_vm0, %v1619_v45, %v533_v4  ;;  %v393_v4 = vrot.slane %v1664_v14, 4 }
  0xce   : > { %v414_v61 = vsel %vm295_vm0, %v413_v52, %v1680_v29  ;;  %v338_v29 = vsel %vm295_vm0, %v1606_v34, %v337_v10  ;;  %v404_v34 = vsel %vm295_vm0, 0.0, %v403_v17  ;;  %v562_v10 = vsel %vm295_vm0, %v1616_v42, %v561_v49 }
  0xcf   : > { %v1720_v63 = vperm.slane %v414_v61, %v1578_v9  ;;  %v1766_v36 = vperm.slane %v338_v29, %v1592_v22  ;;  %v599_v61 = vrot.slane %v1709_v54, 4  ;;  %v1813_v54 = vperm.slane %v534_v57, %v1592_v22 }
  0xd0   : > { %v1725_v2 = vld.sshfl [vmem:[#allocation1] sm:$0xff pattern:$0x75316420]  ;;  %v366_v14 = vsel %vm295_vm0, %v1634_v55, %v365_v25  ;;  %v233_v25 = vrot.slane %v1722_v0, 4 }
  0xd1   : > { %853 = vst [vmem:[#allocation1 + $0x1] ss:$2 sm:$0xff] %v572_v1  ;;  %v419_v7 = vrot.slane %v1720_v63, 4  ;;  %v349_v55 = vrot.slane %v1766_v36, 4 }
  0xd2   : > { %852 = vst [vmem:[#allocation1] ss:$2 sm:$0xff] %v544_v5 }
  0xd3   : > { %v420_v13 = vsel %vm295_vm0, %v419_v7, %v1731_v6  ;;  %v228_v15 = vpop.permute.xlu1 %227  ;;  %v224_v21 = vpop.permute.xlu0 %223 }
  0xd4   : > { %v1741_v20 = vperm.slane %v420_v13, %v1592_v22  ;;  %v441_v39 = vrot.slane %v228_v15, 4  ;;  %v435_v27 = vrot.slane %v224_v21, 4  ;;  %v1750_v19 = vld.sshfl [vmem:[#allocation1 + $0x10] sm:$0xff pattern:$0x75316420]  ;;  %925 = vperm.xlu2 %1304, %v836_v37   ;;  %v666_v35 = vsel %vm295_vm0, %v228_v15, %v221_v18 }
  0xd5   : > { %842 = vst [vmem:[#allocation1 + $0x10] ss:$2 sm:$0xff] %v376_v31  ;;  %v660_v5 = vsel %vm295_vm0, %v224_v21, %v217_v40  ;;  %v600_v15 = vsel %vm295_vm0, 0.0, %v599_v61  ;;  %v1834_v18 = vperm.slane %v562_v10, %v1592_v22  ;;  %v256_v40 = vpop.permute.xlu2 %255 }
  0xd6   : > { %817 = vst [vmem:[#allocation1 + $0x20] ss:$2 sm:$0xff] %v1741_v20  ;;  %v442_v26 = vsel %vm295_vm0, %v441_v39, %v1688_v32  ;;  %v436_v11 = vsel %vm295_vm0, %v435_v27, %v1706_v48  ;;  %v201_v32 = vrot.slane %v1682_v30, 4  ;;  %v1784_v30 = vperm.slane %v666_v35, %v1578_v9 }
  0xd7   : > { %v1762_v33 = vperm.slane %v442_v26, %v1578_v9  ;;  %843 = vst [vmem:[#allocation1 + $0x11] ss:$2 sm:$0xff] %v404_v34  ;;  %v1779_v47 = vperm.slane %v436_v11, %v1578_v9  ;;  %v627_v48 = vrot.slane %v1712_v56, 4  ;;  %v643_v56 = vrot.slane %v1775_v44, 4 }
  0xd8   : > { %v632_v1 = vsel %vm295_vm0, %v1646_v62, %v201_v32  ;;  %v671_v45 = vrot.slane %v1784_v30, 4  ;;  %v1825_v42 = vperm.slane %v660_v5, %v1578_v9  ;;  %v394_v32 = vsel %vm295_vm0, %v1667_v16, %v393_v4 }
  0xd9   : > { %v1771_v37 = vld.sshfl [vmem:[#allocation1] sm:$0xff pattern:$0x75316420]  ;;  %v447_v46 = vrot.slane %v1762_v33, 4  ;;  %v628_v62 = vsel %vm295_vm0, 0.0, %v627_v48  ;;  %v1819_v12 = vperm.slane %v632_v1, %v1578_v9  ;;  %v1869_v48 = vperm.slane %v366_v14, %v1592_v22 }
  0xda   : > { %864 = vst [vmem:[#allocation1] ss:$2 sm:$0xff] %v1758_v51  ;;  %v672_v29 = vsel %vm295_vm0, %v671_v45, %v1825_v42  ;;  %v1874_v16 = vperm.slane %v394_v32, %v1592_v22  ;;  %v573_v14 = vrot.slane %v1834_v18, 4 }
  0xdb   : > { %v1786_v50 = vpop.permute.xlu1 %239  ;;  %v1788_v52 = vpop.permute.xlu0 %235  ;;  %865 = vst [vmem:[#allocation1 + $0x1] ss:$2 sm:$0xff] %v1766_v36  ;;  %v448_v53 = vsel %vm295_vm0, %v447_v46, %v1779_v47  ;;  %v644_v39 = vsel %vm295_vm0, %v643_v56, %v1819_v12  ;;  %v1857_v11 = vperm.slane %v672_v29, %v1592_v22  ;;  %v321_v46 = vrot.slane %v1758_v51, 4 }
  0xdc   : > { %v463_v60 = vrot.slane %v1786_v50, 4  ;;  %v1802_v3 = vperm.slane %v448_v53, %v1592_v22  ;;  %v470_v13 = vsel %vm295_vm0, %v469_v58, %v1788_v52  ;;  %v1850_v59 = vperm.slane %v644_v39, %v1592_v22 }
  0xdd   : > { %v1831_v17 = vperm.slane %v470_v13, %v1578_v9  ;;  %v589_v53 = vrot.slane %v1696_v41, 4  ;;  %v431_v58 = vrot.slane %v1741_v20, 4  ;;  %v491_v51 = vrot.slane %v256_v40, 4 }
  0xde   : > { %v464_v7 = vsel %vm295_vm0, %v463_v60, %v1722_v0  ;;  %819 = vst [vmem:[#allocation1 + $0x21] ss:$2 sm:$0xff] %v1802_v3  ;;  %v1816_v8 = vld.sshfl [vmem:[#allocation1 + $0x10] sm:$0xff pattern:$0x75316420]  ;;  %v237_v60 = vrot.slane %v1788_v52, 4 }
  0xdf   : > { %855 = vst [vmem:[#allocation1 + $0x11] ss:$2 sm:$0xff] %v628_v62  ;;  %v1828_v21 = vperm.slane %v464_v7, %v1578_v9  ;;  %v475_v31 = vrot.slane %v1831_v17, 4  ;;  %v322_v41 = vsel %vm295_vm0, 0.0, %v321_v46  ;;  %v617_v56 = vrot.slane %v1699_v43, 4 }
  0xe0   : > { %854 = vst [vmem:[#allocation1 + $0x10] ss:$2 sm:$0xff] %v600_v15  ;;  %v459_v5 = vrot.slane %v1802_v3, 4  ;;  %v350_v20 = vsel %vm295_vm0, 0.0, %v349_v55  ;;  %v694_v52 = vsel %vm295_vm0, %v1769_v38, %v237_v60  ;;  %v590_v43 = vsel %vm295_vm0, %v1673_v23, %v589_v53 }
  0xe1   : > { %v476_v26 = vsel %vm295_vm0, %v475_v31, %v1828_v21  ;;  %v432_v3 = vsel %vm295_vm0, 0.0, %v431_v58  ;;  %v618_v38 = vsel %vm295_vm0, %v1678_v28, %v617_v56  ;;  %v1905_v23 = vperm.slane %v694_v52, %v1578_v9 }
  0xe2   : > { %v1839_v27 = vld.sshfl [vmem:[#allocation1] sm:$0xff pattern:$0x75316420]  ;;  %v1860_v35 = vperm.slane %v476_v26, %v1592_v22  ;;  %v460_v39 = vsel %vm295_vm0, 0.0, %v459_v5  ;;  %v545_v26 = vrot.slane %v1813_v54, 4  ;;  %v1914_v28 = vperm.slane %v590_v43, %v1592_v22 }
  0xe3   : > { %v1845_v24 = vpop.permute.xlu0 %247  ;;  %876 = vst [vmem:[#allocation1] ss:$2 sm:$0xff] %v1813_v54  ;;  %v252_v49 = vpop.permute.xlu1 %251  ;;  %v655_v46 = vrot.slane %v1850_v59, 4  ;;  %v683_v54 = vrot.slane %v1857_v11, 4 }
  0xe4   : > { %877 = vst [vmem:[#allocation1 + $0x1] ss:$2 sm:$0xff] %v1834_v18  ;;  %v253_v61 = vrot.slane %v252_v49, 4  ;;  %v492_v10 = vsel %vm295_vm0, %v491_v51, %v1845_v24  ;;  %v249_v4 = vrot.slane %v1845_v24, 4  ;;  %v699_v18 = vrot.slane %v1905_v23, 4 }
  0xe5   : > { %v826_v34 = vld.sshfl [vmem:[#allocation1 + $0x20] sm:$0xff pattern:$0x75316420]  ;;  %821 = vst [vmem:[#allocation1 + $0x30] ss:$2 sm:$0xff] %v1860_v35  ;;  %v1909_v29 = vperm.slane %v492_v10, %v1578_v9  ;;  %v546_v60 = vsel %vm295_vm0, 0.0, %v545_v26 }
  0xe6   : > { %832 = vst [vmem:[#allocation1 + $0x20] ss:$2 sm:$0xff] %v1850_v59  ;;  %919 = vperm.xlu0 %1305, %v826_v34   ;;  %v1921_v34 = vperm.slane %v618_v38, %v1592_v22  ;;  %v716_v53 = vsel %vm295_vm0, %v256_v40, %v249_v4  ;;  %v601_v38 = vrot.slane %v1914_v28, 4 }
  0xe7   : > { %833 = vst [vmem:[#allocation1 + $0x21] ss:$2 sm:$0xff] %v1857_v11  ;;  %v1878_v57 = vld.sshfl [vmem:[#allocation1 + $0x10] sm:$0xff pattern:$0x75316420]  ;;  %v574_v11 = vsel %vm295_vm0, 0.0, %v573_v14 }
  0xe8   : > { %866 = vst [vmem:[#allocation1 + $0x10] ss:$2 sm:$0xff] %v1869_v48 }
  0xe9   : > { %867 = vst [vmem:[#allocation1 + $0x11] ss:$2 sm:$0xff] %v1874_v16 }
  0xeb   : > { %v260_v1 = vpop.permute.xlu0 %259  ;;  %v1881_v36 = vld.sshfl [vmem:[#allocation1] sm:$0xff pattern:$0x75316420] }
  0xec   : > { %v497_v7 = vrot.slane %v260_v1, 4  ;;  %888 = vst [vmem:[#allocation1] ss:$2 sm:$0xff] %v322_v41  ;;  %v722_v15 = vsel %vm295_vm0, %v260_v1, %v253_v61  ;;  %v684_v61 = vsel %vm295_vm0, 0.0, %v683_v54  ;;  %v1947_v1 = vperm.slane %v716_v53, %v1578_v9 }
  0xed   : > { %889 = vst [vmem:[#allocation1 + $0x1] ss:$2 sm:$0xff] %v350_v20  ;;  %v1917_v0 = vperm.slane %v722_v15, %v1578_v9  ;;  %v656_v41 = vsel %vm295_vm0, 0.0, %v655_v46  ;;  %v673_v15 = vrot.slane %v1825_v42, 4 }
  0xee   : > { %v498_v45 = vsel %vm295_vm0, %v497_v7, %v252_v49  ;;  %v838_v62 = vld.sshfl [vmem:[#allocation1 + $0x20] sm:$0xff pattern:$0x75316420]  ;;  %v688_v49 = vsel %vm295_vm0, %v1786_v50, %v233_v25  ;;  %v377_v50 = vrot.slane %v1869_v48, 4  ;;  %v449_v48 = vrot.slane %v1779_v47, 4 }
  0xef   : > { %v1897_v13 = vperm.slane %v498_v45, %v1578_v9  ;;  %844 = vst [vmem:[#allocation1 + $0x20] ss:$2 sm:$0xff] %v432_v3  ;;  %931 = vperm.xlu2 %1304, %v838_v62   ;;  %v727_v59 = vrot.slane %v1917_v0, 4  ;;  %v1943_v51 = vperm.slane %v688_v49, %v1578_v9  ;;  %v405_v7 = vrot.slane %v1874_v16, 4 }
  0xf0   : > { %845 = vst [vmem:[#allocation1 + $0x21] ss:$2 sm:$0xff] %v460_v39  ;;  %v1925_v32 = vld.sshfl [vmem:[#allocation1 + $0x10] sm:$0xff pattern:$0x75316420]  ;;  %v421_v9 = vrot.slane %v1731_v6, 4  ;;  %v450_v43 = vsel %vm295_vm0, %v1762_v33, %v449_v48 }
  0xf1   : > { %v503_v31 = vrot.slane %v1897_v13, 4  ;;  %878 = vst [vmem:[#allocation1 + $0x10] ss:$2 sm:$0xff] %v1914_v28  ;;  %v700_v56 = vsel %vm295_vm0, %v699_v18, %v1943_v51  ;;  %v728_v5 = vsel %vm295_vm0, %v727_v59, %v1947_v1  ;;  %v378_v20 = vsel %vm295_vm0, 0.0, %v377_v50 }
  0xf2   : > { %879 = vst [vmem:[#allocation1 + $0x11] ss:$2 sm:$0xff] %v1921_v34  ;;  %v422_v10 = vsel %vm295_vm0, %v1720_v63, %v421_v9  ;;  %v734_v45 = vperm.slane %v728_v5, %v1592_v22  ;;  %v406_v6 = vsel %vm295_vm0, 0.0, %v405_v7  ;;  %v458_v3 = vperm.slane %v450_v43, %v1592_v22 }
  0xf3   : > { %v504_v24 = vsel %vm295_vm0, %v503_v31, %v1909_v29  ;;  %v430_v16 = vperm.slane %v422_v10, %v1592_v22  ;;  %v487_v62 = vrot.slane %v1860_v35, 4  ;;  %v645_v25 = vrot.slane %v1819_v12, 4 }
  0xf4   : > { %v510_v55 = vperm.slane %v504_v24, %v1592_v22  ;;  %v1936_v58 = vld.sshfl [vmem:[#allocation1] sm:$0xff pattern:$0x75316420]  ;;  %v629_v39 = vrot.slane %v1921_v34, 4  ;;  %v674_v35 = vsel %vm295_vm0, %v1784_v30, %v673_v15  ;;  %v602_v12 = vsel %vm295_vm0, 0.0, %v601_v38 }
  0xf5   : > { %900 = vst [vmem:[#allocation1] ss:$2 sm:$0xff] %v546_v60  ;;  %v488_v4 = vsel %vm295_vm0, 0.0, %v487_v62  ;;  %v682_v14 = vperm.slane %v674_v35, %v1592_v22  ;;  %v739_v34 = vrot.slane %v734_v45, 4  ;;  %v433_v24 = vrot.slane %v430_v16, 4 }
  0xf6   : > { %823 = vst [vmem:[#allocation1 + $0x31] ss:$2 sm:$0xff] %v510_v55  ;;  %v515_v33 = vrot.slane %v510_v55, 4  ;;  %v630_v28 = vsel %vm295_vm0, 0.0, %v629_v39  ;;  %v461_v49 = vrot.slane %v458_v3, 4  ;;  %v477_v55 = vrot.slane %v1828_v21, 4 }
  0xf7   : > { %v850_v40 = vld.sshfl [vmem:[#allocation1 + $0x20] sm:$0xff pattern:$0x75316420]  ;;  %940 = vperm.xlu2 %1304, %v1816_v8   ;;  %901 = vst [vmem:[#allocation1 + $0x1] ss:$2 sm:$0xff] %v574_v11  ;;  %v706_v8 = vperm.slane %v700_v56, %v1592_v22  ;;  %v740_v46 = vsel %vm295_vm0, 0.0, %v739_v34 }
  0xf8   : > { %857 = vst [vmem:[#allocation1 + $0x21] ss:$2 sm:$0xff] %v684_v61  ;;  %v516_v42 = vsel %vm295_vm0, 0.0, %v515_v33  ;;  %v434_v53 = vsel %vm295_vm0, 0.0, %v433_v24  ;;  %v505_v60 = vrot.slane %v1909_v29, 4  ;;  %v462_v11 = vsel %vm295_vm0, 0.0, %v461_v49 }
  0xf9   : > { %856 = vst [vmem:[#allocation1 + $0x20] ss:$2 sm:$0xff] %v656_v41  ;;  %v1960_v52 = vld.sshfl [vmem:[#allocation1 + $0x10] sm:$0xff pattern:$0x75316420]  ;;  %v711_v30 = vrot.slane %v706_v8, 4 }
  0xfa   : > { %890 = vst [vmem:[#allocation1 + $0x10] ss:$2 sm:$0xff] %v378_v20  ;;  %v506_v50 = vsel %vm295_vm0, %v1897_v13, %v505_v60  ;;  %v685_v41 = vrot.slane %v682_v14, 4  ;;  %v701_v56 = vrot.slane %v1943_v51, 4  ;;  %v729_v13 = vrot.slane %v1947_v1, 4 }
  0xfb   : > { %891 = vst [vmem:[#allocation1 + $0x11] ss:$2 sm:$0xff] %v406_v6  ;;  %v712_v18 = vsel %vm295_vm0, 0.0, %v711_v30 }
  0xfc   : > { %v686_v5 = vsel %vm295_vm0, 0.0, %v685_v41  ;;  %v730_v7 = vsel %vm295_vm0, %v1917_v0, %v729_v13  ;;  %v1438_v41 = vmov 0.0  }
  0xfd   : > { %v827_v47 = vld.sshfl [vmem:[#allocation1 + $0x30] sm:$0xff pattern:$0x75316420]  ;;  %v738_v9 = vperm.slane %v730_v7, %v1592_v22  ;;  %743 = vst [vmem:[%s2057_s11] sm:$0x1] %v1438_v41 }
  0xfe   : > { %834 = vst [vmem:[#allocation1 + $0x30] ss:$2 sm:$0xff] %v706_v8  ;;  %922 = vperm.xlu1 %1303, %v827_v47   ;;  %v1008_v8 = vlaneseq }
  0xff   : > { %835 = vst [vmem:[#allocation1 + $0x31] ss:$2 sm:$0xff] %v734_v45  ;;  %949 = vperm.xlu2 %1304, %v1771_v37   ;;  %v646_v37 = vsel %vm295_vm0, %v1775_v44, %v645_v25 }
 0x100   : > { %v1971_v63 = vld.sshfl [vmem:[#allocation1 + $0x20] sm:$0xff pattern:$0x75316420]  ;;  %v654_v44 = vperm.slane %v646_v37, %v1592_v22  ;;  %v2020_v10 = vand.u32 127, %v1008_v8  ;;  %744 = vst [vmem:[%s2057_s11 + $0x3] sm:$0x1] %v1438_v41 }
 0x101   : > { %868 = vst [vmem:[#allocation1 + $0x20] ss:$2 sm:$0xff] %v430_v16 }
 0x102   : > { %869 = vst [vmem:[#allocation1 + $0x21] ss:$2 sm:$0xff] %v458_v3  ;;  %v1985_v26 = vld.sshfl [vmem:[#allocation1 + $0x10] sm:$0xff pattern:$0x75316420]  ;;  %v657_v61 = vrot.slane %v654_v44, 4 }
 0x103   : > { %902 = vst [vmem:[#allocation1 + $0x10] ss:$2 sm:$0xff] %v602_v12  ;;  %v1019_v49 = vadd.s32 4294967272, %v2020_v10 }
 0x104   : > { %903 = vst [vmem:[#allocation1 + $0x11] ss:$2 sm:$0xff] %v630_v28 }
 0x106   : > { %v839_v31 = vld.sshfl [vmem:[#allocation1 + $0x30] sm:$0xff pattern:$0x75316420]  ;;  %928 = vperm.xlu1 %1303, %v1750_v19  }
 0x107   : > { %846 = vst [vmem:[#allocation1 + $0x30] ss:$2 sm:$0xff] %v488_v4  ;;  %934 = vperm.xlu0 %1305, %v839_v31  }
 0x108   : > { %847 = vst [vmem:[#allocation1 + $0x31] ss:$2 sm:$0xff] %v516_v42 }
 0x109   : > { %v874_v19 = vld.sshfl [vmem:[#allocation1 + $0x20] sm:$0xff pattern:$0x75316420] }
 0x10a   : > { %880 = vst [vmem:[#allocation1 + $0x20] ss:$2 sm:$0xff] %v654_v44 }
 0x10b   : > { %881 = vst [vmem:[#allocation1 + $0x21] ss:$2 sm:$0xff] %v682_v14  ;;  %v909_v33 = vld.sshfl [vmem:[#allocation1 + $0x10] sm:$0xff pattern:$0x75316420] }
 0x10e   : > { %937 = vperm.xlu1 %1303, %v1725_v2   ;;  %v478_v2 = vsel %vm295_vm0, %v1831_v17, %v477_v55  ;;  %v658_v17 = vsel %vm295_vm0, 0.0, %v657_v61 }
 0x10f   : > { %v851_v54 = vld.sshfl [vmem:[#allocation1 + $0x30] sm:$0xff pattern:$0x75316420]  ;;  %943 = vperm.xlu0 %1305, %v850_v40   ;;  %v486_v21 = vperm.slane %v478_v2, %v1592_v22  ;;  %v514_v40 = vperm.slane %v506_v50, %v1592_v22  ;;  %v1023_v50 = vadd.s32 4294967264, %v2020_v10 }
 0x110   : > { %859 = vst [vmem:[#allocation1 + $0x31] ss:$2 sm:$0xff] %v740_v46  ;;  %v1015_v46 = vadd.s32 4294967280, %v2020_v10 }
 0x111   : > { %858 = vst [vmem:[#allocation1 + $0x30] ss:$2 sm:$0xff] %v712_v18  ;;  %v489_v20 = vrot.slane %v486_v21, 4 }
 0x112   : > { %v886_v59 = vld.sshfl [vmem:[#allocation1 + $0x20] sm:$0xff pattern:$0x75316420] }
 0x113   : > { %892 = vst [vmem:[#allocation1 + $0x20] ss:$2 sm:$0xff] %v434_v53  ;;  %v490_v0 = vsel %vm295_vm0, 0.0, %v489_v20  ;;  %v1039_v20 = vadd.s32 4294967232, %v2020_v10 }
 0x114   : > { %893 = vst [vmem:[#allocation1 + $0x21] ss:$2 sm:$0xff] %v462_v11  ;;  %v1027_v11 = vadd.s32 4294967256, %v2020_v10 }
 0x116   : > { %946 = vperm.xlu1 %1303, %v851_v54  }
 0x117   : > { %952 = vperm.xlu0 %1305, %v1878_v57   ;;  %v702_v57 = vsel %vm295_vm0, %v1905_v23, %v701_v56  ;;  %v517_v23 = vrot.slane %v514_v40, 4  ;;  %v1031_v56 = vadd.s32 4294967248, %v2020_v10 }
 0x118   : > { %v863_v29 = vld.sshfl [vmem:[#allocation1 + $0x30] sm:$0xff pattern:$0x75316420]  ;;  %v710_v51 = vperm.slane %v702_v57, %v1592_v22  ;;  %v1011_v22 = vadd.s32 4294967288, %v2020_v10 }
 0x119   : > { %870 = vst [vmem:[#allocation1 + $0x30] ss:$2 sm:$0xff] %v486_v21  ;;  %958 = vperm.xlu2 %1304, %v863_v29   ;;  %v518_v45 = vsel %vm295_vm0, 0.0, %v517_v23  ;;  %v1035_v23 = vadd.s32 4294967240, %v2020_v10 }
 0x11a   : > { %871 = vst [vmem:[#allocation1 + $0x31] ss:$2 sm:$0xff] %v514_v40  ;;  %v713_v47 = vrot.slane %v710_v51, 4 }
 0x11b   : > { %v898_v48 = vld.sshfl [vmem:[#allocation1 + $0x20] sm:$0xff pattern:$0x75316420] }
 0x11c   : > { %904 = vst [vmem:[#allocation1 + $0x20] ss:$2 sm:$0xff] %v658_v17  ;;  %v714_v3 = vsel %vm295_vm0, 0.0, %v713_v47  ;;  %v1043_v47 = vadd.s32 4294967224, %v2020_v10 }
 0x11d   : > { %905 = vst [vmem:[#allocation1 + $0x21] ss:$2 sm:$0xff] %v686_v5 }
 0x11e   : > { %955 = vperm.xlu1 %1303, %v1971_v63  }
 0x11f   : > { %961 = vperm.xlu0 %1305, %v1839_v27  }
 0x121   : > { %967 = vperm.xlu2 %1304, %v874_v19   ;;  %v875_v1 = vld.sshfl [vmem:[#allocation1 + $0x30] sm:$0xff pattern:$0x75316420] }
 0x122   : > { %882 = vst [vmem:[#allocation1 + $0x30] ss:$2 sm:$0xff] %v710_v51 }
 0x123   : > { %883 = vst [vmem:[#allocation1 + $0x31] ss:$2 sm:$0xff] %v738_v9 }
 0x126   : > { %964 = vperm.xlu1 %1303, %v1925_v32   ;;  %v917_v43 = vpop.permute.xlu2 %916  ;;  %v741_v32 = vrot.slane %v738_v9, 4 }
 0x127   : > { %970 = vperm.xlu0 %1305, %v875_v1   ;;  %v1012_v6 = vperm.slane %v917_v43, %v1011_v22 }
 0x128   : > { %v742_v62 = vsel %vm295_vm0, 0.0, %v741_v32  ;;  %vm1102_vm0 = vcmask 1041409  }
 0x129   : > { %976 = vperm.xlu2 %1304, %v1960_v52  }
 0x12a   : > { %v887_v27 = vld.sshfl [vmem:[#allocation1 + $0x30] sm:$0xff pattern:$0x75316420] }
 0x12b   : > { %894 = vst [vmem:[#allocation1 + $0x30] ss:$2 sm:$0xff] %v490_v0 }
 0x12c   : > { %895 = vst [vmem:[#allocation1 + $0x31] ss:$2 sm:$0xff] %v518_v45 }
 0x12e   : > { %973 = vperm.xlu1 %1303, %v1881_v36   ;;  %v908_v36 = vld.sshfl [vmem:[#allocation1] sm:$0xff pattern:$0x75316420]  ;;  %v926_v25 = vpop.permute.xlu2 %925 }
 0x12f   : > { %979 = vperm.xlu0 %1305, %v886_v59   ;;  %v1024_v5 = vperm.slane %v926_v25, %v1023_v50 }
 0x130   : > { %v914_v52 = vpop.permute.xlu1 %913 }
 0x131   : > { %985 = vperm.xlu2 %1304, %v1936_v58   ;;  %v1010_v16 = vperm.slane %v914_v52, %v2020_v10  ;;  %v910_v58 = vld.sshfl [vmem:[#allocation1 + $0x20] sm:$0xff pattern:$0x75316420] }
 0x133   : > { %v899_v63 = vld.sshfl [vmem:[#allocation1 + $0x30] sm:$0xff pattern:$0x75316420]  ;;  %v1014_v15 = vsel %vm1013_vm1, %v1012_v6, %v1010_v16 }
 0x134   : > { %906 = vst [vmem:[#allocation1 + $0x30] ss:$2 sm:$0xff] %v714_v3 }
 0x135   : > { %907 = vst [vmem:[#allocation1 + $0x31] ss:$2 sm:$0xff] %v742_v62 }
 0x136   : > { %982 = vperm.xlu1 %1303, %v887_v27  }
 0x137   : > { %988 = vperm.xlu0 %1305, %v1985_v26  }
 0x139   : > { %994 = vperm.xlu2 %1304, %v899_v63  }
 0x13c   : > { %v911_v38 = vld.sshfl [vmem:[#allocation1 + $0x30] sm:$0xff pattern:$0x75316420] }
 0x13e   : > { %991 = vperm.xlu1 %1303, %v898_v48  }
 0x13f   : > { %997 = vperm.xlu0 %1305, %v908_v36   ;;  %v1051_v36 = vadd.s32 4294967208, %v2020_v10 }
 0x141   : > { %1003 = vperm.xlu2 %1304, %v910_v58   ;;  %v1047_v58 = vadd.s32 4294967216, %v2020_v10 }
 0x146   : > { %1000 = vperm.xlu1 %1303, %v909_v33  }
 0x147   : > { %1006 = vperm.xlu0 %1305, %v911_v38  }
 0x149   : > { %v932_v39 = vpop.permute.xlu2 %931 }
 0x14a   : > { %v1032_v27 = vperm.slane %v932_v39, %v1031_v56 }
 0x151   : > { %v2031_v31 = vpop.permute.xlu2 %940 }
 0x152   : > { %v1044_v25 = vperm.slane %v2031_v31, %v1043_v47 }
 0x158   : > { %v920_v4 = vpop.permute.xlu0 %919 }
 0x159   : > { %v2035_v26 = vpop.permute.xlu2 %949  ;;  %v1016_v60 = vperm.slane %v920_v4, %v1015_v46 }
 0x15b   : > { %v1018_v61 = vsel %vm1017_vm2, %v1016_v60, %v1014_v15 }
 0x170   : > { %v923_v37 = vpop.permute.xlu1 %922 }
 0x171   : > { %v1020_v59 = vperm.slane %v923_v37, %v1019_v49 }
 0x173   : > { %v2041_v44 = vpop.permute.xlu2 %958  ;;  %v1022_v17 = vsel %vm1021_vm3, %v1020_v59, %v1018_v61 }
 0x174   : > { %v1026_v1 = vsel %vm1025_vm4, %v1024_v5, %v1022_v17 }
 0x178   : > { %v929_v35 = vpop.permute.xlu1 %928 }
 0x179   : > { %v2033_v42 = vpop.permute.xlu0 %934  ;;  %v1028_v13 = vperm.slane %v929_v35, %v1027_v11 }
 0x17a   : > { %v1036_v6 = vperm.slane %v2033_v42, %v1035_v23 }
 0x17b   : > { %v968_v34 = vpop.permute.xlu2 %967  ;;  %v1030_v8 = vsel %vm1029_vm5, %v1028_v13, %v1026_v1 }
 0x17c   : > { %v1074_v40 = vperm.slane %v968_v34, %v1015_v46  ;;  %v1034_v43 = vsel %vm1033_vm6, %v1032_v27, %v1030_v8 }
 0x17d   : > { %v1038_v15 = vsel %vm1037_vm7, %v1036_v6, %v1034_v43 }
 0x180   : > { %v2037_v12 = vpop.permute.xlu1 %937 }
 0x181   : > { %v2039_v28 = vpop.permute.xlu0 %943  ;;  %v1040_v32 = vperm.slane %v2037_v12, %v1039_v20  ;;  %v1055_v12 = vadd.s32 4294967200, %v2020_v10 }
 0x182   : > { %v1048_v34 = vperm.slane %v2039_v28, %v1047_v58 }
 0x183   : > { %v977_v55 = vpop.permute.xlu2 %976  ;;  %v1042_v33 = vsel %vm1041_vm8, %v1040_v32, %v1038_v15  ;;  %v1056_v28 = vperm.slane %v2035_v26, %v1055_v12 }
 0x184   : > { %v1046_v35 = vsel %vm1045_vm9, %v1044_v25, %v1042_v33 }
 0x188   : > { %v2043_v14 = vpop.permute.xlu1 %946 }
 0x189   : > { %v2045_v19 = vpop.permute.xlu0 %952  ;;  %v1052_v42 = vperm.slane %v2043_v14, %v1051_v36 }
 0x18b   : > { %v986_v51 = vpop.permute.xlu2 %985 }
 0x18c   : > { %v1086_v4 = vperm.slane %v986_v51, %v1039_v20 }
 0x190   : > { %v2047_v30 = vpop.permute.xlu1 %955 }
 0x191   : > { %v962_v24 = vpop.permute.xlu0 %961 }
 0x192   : > { %v1071_v2 = vperm.slane %v962_v24, %v2020_v10 }
 0x193   : > { %v995_v39 = vpop.permute.xlu2 %994 }
 0x198   : > { %v965_v54 = vpop.permute.xlu1 %964 }
 0x199   : > { %v971_v18 = vpop.permute.xlu0 %970  ;;  %v1072_v53 = vperm.slane %v965_v54, %v1011_v22  ;;  %v1080_v22 = vperm.slane %v977_v55, %v1027_v11  ;;  %v1050_v55 = vsel %vm1049_vm10, %v1048_v34, %v1046_v35  ;;  %v1092_v11 = vperm.slane %v995_v39, %v1051_v36 }
 0x19a   : > { %v1076_v9 = vperm.slane %v971_v18, %v1019_v49  ;;  %v1063_v18 = vadd.s32 4294967184, %v2020_v10  ;;  %v1054_v14 = vsel %vm1053_vm11, %v1052_v42, %v1050_v55 }
 0x19b   : > { %v1073_v21 = vsel %vm1013_vm1, %v1072_v53, %v1071_v2  ;;  %v1059_v53 = vadd.s32 4294967192, %v2020_v10  ;;  %v1058_v2 = vsel %vm1057_vm12, %v1056_v28, %v1054_v14 }
 0x19c   : > { %v1075_v57 = vsel %vm1017_vm2, %v1074_v40, %v1073_v21  ;;  %v1067_v21 = vadd.s32 4294967176, %v2020_v10  ;;  %v1004_v40 = vpop.permute.xlu2 %1003 }
 0x19d   : > { %v1077_v0 = vsel %vm1021_vm3, %v1076_v9, %v1075_v57  ;;  %v1060_v61 = vperm.slane %v2045_v19, %v1059_v53  ;;  %v1098_v19 = vperm.slane %v1004_v40, %v1063_v18 }
 0x1a0   : > { %v974_v29 = vpop.permute.xlu1 %973 }
 0x1a1   : > { %v980_v48 = vpop.permute.xlu0 %979  ;;  %v1078_v7 = vperm.slane %v974_v29, %v1023_v50  ;;  %v1064_v50 = vperm.slane %v2047_v30, %v1063_v18 }
 0x1a2   : > { %v1082_v62 = vperm.slane %v980_v48, %v1031_v56  ;;  %v1062_v56 = vsel %vm1061_vm13, %v1060_v61, %v1058_v2  ;;  %v1068_v48 = vperm.slane %v2041_v44, %v1067_v21 }
 0x1a3   : > { %v1079_v45 = vsel %vm1025_vm4, %v1078_v7, %v1077_v0  ;;  %v1066_v10 = vsel %vm1065_vm14, %v1064_v50, %v1062_v56 }
 0x1a4   : > { %v1081_v16 = vsel %vm1029_vm5, %v1080_v22, %v1079_v45  ;;  %v1070_v51 = vsel %vm1069_vm15, %v1068_v48, %v1066_v10 }
 0x1a5   : > { %v1083_v38 = vsel %vm1033_vm6, %v1082_v62, %v1081_v16 }
 0x1a8   : > { %v983_v52 = vpop.permute.xlu1 %982 }
 0x1a9   : > { %v989_v3 = vpop.permute.xlu0 %988  ;;  %v1084_v63 = vperm.slane %v983_v52, %v1035_v23 }
 0x1aa   : > { %v1088_v54 = vperm.slane %v989_v3, %v1043_v47 }
 0x1ab   : > { %v1085_v37 = vsel %vm1037_vm7, %v1084_v63, %v1083_v38 }
 0x1ac   : > { %v1087_v24 = vsel %vm1041_vm8, %v1086_v4, %v1085_v37 }
 0x1ad   : > { %v1089_v60 = vsel %vm1045_vm9, %v1088_v54, %v1087_v24 }
 0x1b0   : > { %v992_v46 = vpop.permute.xlu1 %991 }
 0x1b1   : > { %v1090_v31 = vperm.slane %v992_v46, %v1047_v58  ;;  %v998_v49 = vpop.permute.xlu0 %997 }
 0x1b2   : > { %v1094_v26 = vperm.slane %v998_v49, %v1055_v12 }
 0x1b3   : > { %v1091_v59 = vsel %vm1049_vm10, %v1090_v31, %v1089_v60 }
 0x1b4   : > { %v1093_v29 = vsel %vm1053_vm11, %v1092_v11, %v1091_v59 }
 0x1b5   : > { %v1095_v30 = vsel %vm1057_vm12, %v1094_v26, %v1093_v29 }
 0x1b8   : > { %v1001_v41 = vpop.permute.xlu1 %1000 }
 0x1b9   : > { %v1096_v17 = vperm.slane %v1001_v41, %v1059_v53  ;;  %v1007_v13 = vpop.permute.xlu0 %1006 }
 0x1ba   : > { %v1100_v57 = vperm.slane %v1007_v13, %v1067_v21 }
 0x1bb   : > { %v1097_v5 = vsel %vm1061_vm13, %v1096_v17, %v1095_v30 }
 0x1bc   : > { %v1099_v7 = vsel %vm1065_vm14, %v1098_v19, %v1097_v5 }
 0x1bd   : > { %v1101_v9 = vsel %vm1069_vm15, %v1100_v57, %v1099_v7 }
 0x1be   : > { %v1103_v1 = vsel %vm1102_vm0, %v1101_v9, %v1070_v51 }
 0x1bf   : > { %1105 = vst [vmem:[%s2057_s11 + $0x1] sm:$0x3] %v1103_v1 }
 0x1c0   : > { %1363 = shalt.err (!%p1360_p4)
}
 0x1c1   : > { %1224 = dma.vmem_to_hbm [thread:$0]  (%p1499_p11), %s1120_s10, 64, %s1122_s22, %s1107_s23  }
 0x1c2 PF: > { %s1133_s16 = sand.u32 1, %s1390_s6   ;;  %p2147_p7 = scmp.ge.s32.totalorder %s1402_s9, 2 }
 0x1c3   : > { %s1134_s30 = scalar_lea.sflag [#allocation4], %s1133_s16 }
 0x1c4   : > { %p1231_p5 = pnand %p2147_p7, %p1503_p12 }
 0x1c6   : > { %p1232_p8 = pneg %p1231_p5 }
 0x1c8   : > { %1385 = dma.done.wait (%p1232_p8), %s1134_s30, 64  }
 0x1c9   : > { %1387 = vsyncadd (%p1232_p8), %s1134_s30, 4294967232  ;;  %p14_p10 = scmp.ge.s32.totalorder %s1474_s12, 4   ;;  %s2148_s6 = smov %s1394_s7 }
 0x1ca   : > { %s2149_s7 = smov %s1398_s8  ;;  %s2150_s8 = smov %s1486_s15 }
 0x1cb   : > { %s2151_s9 = smov %s1474_s12  ;;  %16 = sbr.rel (!%p14_p10) target bundleno = 5 (0x5), region = 76 }
 0x1d0   :  { %1140 = vsyncpa [#allocation3], 1 }
 0x1d1   :  { %1142 = vsyncpa [#allocation3 + $0x1], 1 }
 0x1d2   :  { %1143 = vsyncpa [#allocation4], 1 }
 0x1d3   :  { %1145 = vsyncpa [#allocation4 + $0x1], 1 }

</bundles_post_ra>
